<compile_context>
chip_gen: v7x
topology: tpu7x:2x2x1
jax: 0.10.0
libtpu: 0.0.40
codegen_flags: <defaults>
</compile_context>

<pallas_src>
import functools

import jax
import jax.numpy as jnp
from jax.experimental import pallas as pl
from jax.experimental.pallas import tpu as pltpu


def _round_up(n, m):
    return ((n + m - 1) // m) * m


def _lstm_disc_kernel(
    x_ref,        # (TB, T)
    wg_ref,       # (T, 3*Hp)  fused [i | g | o] input->gate weights (pre-transposed)
    bg_ref,       # (1, 3*Hp)  fused b_ih + b_hh for gates i, g, o
    w1_ref,       # (Hp, I)
    b1_ref,       # (1, I)
    w2_ref,       # (1, I)     final Linear weight as a row vector
    b2_ref,       # (1, 1)     SMEM scalar
    o_ref,        # (1, TB)    lane-dense output row
    *,
    hp,
):
    x = x_ref[...]                                                   # (TB, T)

    # --- fused single-step LSTM gates (forget gate omitted: it scales c0==0) ---
    gates = (
        jnp.dot(x, wg_ref[...], preferred_element_type=jnp.float32) + bg_ref[...]
    )                                                                # (TB, 3*Hp)
    i_gate = jax.nn.sigmoid(gates[:, 0:hp])          # lane-tile aligned slices
    g_gate = jnp.tanh(gates[:, hp:2 * hp])
    o_gate = jax.nn.sigmoid(gates[:, 2 * hp:3 * hp])
    h = o_gate * jnp.tanh(i_gate * g_gate)                           # (TB, Hp)

    # --- linear_1: Linear(H, inter) + LeakyReLU(0.1) ---------------------------
    inter = jnp.dot(h, w1_ref[...], preferred_element_type=jnp.float32) + b1_ref[...]
    inter = jnp.where(inter >= 0, inter, 0.1 * inter)                # (TB, I)

    # --- linear_2: Linear(inter, 1) + Sigmoid as VPU multiply + lane reduce ----
    logit = jnp.sum(inter * w2_ref[...], axis=-1, keepdims=True) + b2_ref[0, 0]
    # Lane-dense store: one small (TB,1)->(1,TB) transpose rides the XLU slot.
    o_ref[...] = jnp.transpose(jax.nn.sigmoid(logit))


def lstm_discriminator(x, params, *, block_b=512):
    """x: (B, ts_dim) float32 -> (B, 1) float32."""
    B, T = x.shape
    Hp, I = params["w1"].shape          # Hp = hidden padded to a 128-lane boundary
    assert params["w_gates"].shape == (T, 3 * Hp)

    # Batch tile. The lane-dense output block (1, TB) needs TB % 128 == 0 unless
    # TB spans the whole batch. Never pad x in the wrapper (extra HBM pass);
    # a ragged last tile is handled by Pallas' partial-block masking.
    if B <= 256:
        TB = B                                   # single step; blocks == full dims
    else:
        tb_cap = max(128, (block_b // 128) * 128)
        tb_half = _round_up(pl.cdiv(B, 2), 128)  # ensure >=2 steps (v7x megacore)
        TB = min(tb_cap, tb_half)
    grid = (pl.cdiv(B, TB),)

    resident = dict(pipeline_mode=pl.Buffered(1))  # grid-invariant: single buffer

    out_row = pl.pallas_call(
        functools.partial(_lstm_disc_kernel, hp=Hp),
        out_shape=jax.ShapeDtypeStruct((1, B), jnp.float32),
        grid=grid,
        in_specs=[
            pl.BlockSpec((TB, T), lambda i: (i, 0)),                  # x: batch-tiled
            pl.BlockSpec((T, 3 * Hp), lambda i: (0, 0), **resident),  # weights stay
            pl.BlockSpec((1, 3 * Hp), lambda i: (0, 0), **resident),  #   VMEM-resident
            pl.BlockSpec((Hp, I), lambda i: (0, 0), **resident),
            pl.BlockSpec((1, I), lambda i: (0, 0), **resident),
            pl.BlockSpec((1, I), lambda i: (0, 0), **resident),
            pl.BlockSpec(memory_space=pltpu.MemorySpace.SMEM),        # b2 scalar
        ],
        out_specs=pl.BlockSpec((1, TB), lambda i: (0, i)),            # lane-dense row
        compiler_params=pltpu.CompilerParams(
            dimension_semantics=("parallel",),                        # megacore on v7x
        ),
    )(
        x,
        params["w_gates"], params["b_gates"],
        params["w1"], params["b1"],
        params["w2_row"], params["b2"],
    )
    return out_row.reshape(B, 1)


def init_params(key, ts_dim, hidden_dim, inter_dim, dtype=jnp.float32):
    """Deterministic synthetic init (PyTorch-style uniform ranges).

    LSTM gate weights are fused in [i | g | o] order (forget gate dropped: it
    multiplies c0 == 0) and each gate segment is zero-padded to a 128-lane
    boundary so the in-kernel gate slices are lane-tile aligned. Padded lanes
    produce h == 0 and zero rows in w1, so results are unchanged.
    `dtype` controls storage of the two matmul weight matrices (use bf16 for
    production shapes on v6e/v7x; accumulation stays f32).
    """
    ks = jax.random.split(key, 7)
    H, T = hidden_dim, ts_dim
    Hp = _round_up(H, 128)

    k_lstm = 1.0 / jnp.sqrt(hidden_dim)
    w_ih = jax.random.uniform(ks[0], (4 * H, T), jnp.float32, -k_lstm, k_lstm)
    b_ih = jax.random.uniform(ks[1], (4 * H,), jnp.float32, -k_lstm, k_lstm)
    b_hh = jax.random.uniform(ks[2], (4 * H,), jnp.float32, -k_lstm, k_lstm)
    b = b_ih + b_hh

    # PyTorch gate order is (i, f, g, o); keep i, g, o; pad each segment to Hp.
    w_gates = jnp.zeros((T, 3 * Hp), jnp.float32)
    b_gates = jnp.zeros((1, 3 * Hp), jnp.float32)
    for dst, g in enumerate((0, 2, 3)):
        w_gates = w_gates.at[:, dst * Hp:dst * Hp + H].set(w_ih[g * H:(g + 1) * H].T)
        b_gates = b_gates.at[0, dst * Hp:dst * Hp + H].set(b[g * H:(g + 1) * H])

    k1 = 1.0 / jnp.sqrt(hidden_dim)
    w1 = jax.random.uniform(ks[3], (inter_dim, H), jnp.float32, -k1, k1)
    b1 = jax.random.uniform(ks[4], (inter_dim,), jnp.float32, -k1, k1)
    w1p = jnp.zeros((Hp, inter_dim), jnp.float32).at[:H, :].set(w1.T)

    k2 = 1.0 / jnp.sqrt(inter_dim)
    w2 = jax.random.uniform(ks[5], (1, inter_dim), jnp.float32, -k2, k2)
    b2 = jax.random.uniform(ks[6], (1,), jnp.float32, -k2, k2)

    return {
        "w_gates": w_gates.astype(dtype), "b_gates": b_gates,
        "w1": w1p.astype(dtype), "b1": b1.reshape(1, inter_dim),
        "w2_row": w2, "b2": b2.reshape(1, 1),
    }


def reference_forward(x, params):
    """Pure-JAX reference of the same math (sanity check)."""
    Hp = params["w1"].shape[0]
    gates = x @ params["w_gates"].astype(jnp.float32) + params["b_gates"]
    i = jax.nn.sigmoid(gates[:, 0:Hp])
    g = jnp.tanh(gates[:, Hp:2 * Hp])
    o = jax.nn.sigmoid(gates[:, 2 * Hp:3 * Hp])
    h = o * jnp.tanh(i * g)
    inter = h @ params["w1"].astype(jnp.float32) + params["b1"]
    inter = jnp.where(inter >= 0, inter, 0.1 * inter)
    return jax.nn.sigmoid(inter @ params["w2_row"].T + params["b2"])


if __name__ == "__main__":
    B, TS_DIM, HIDDEN, INTER = 8, 16, 32, 16   # small shapes, consistent with forward

    key = jax.random.PRNGKey(0)
    kx, kp = jax.random.split(key)
    x = jax.random.normal(kx, (B, TS_DIM), dtype=jnp.float32)
    params = init_params(kp, TS_DIM, HIDDEN, INTER)

    out = jax.block_until_ready(lstm_discriminator(x, params))
    ref = jax.block_until_ready(reference_forward(x, params))

    assert out.shape == (B, 1), out.shape
    assert jnp.allclose(out, ref, atol=1e-5, rtol=1e-5), (out, ref)
    print("KERNEL_OK")
</pallas_src>

<mosaic_0001>
module attributes {stable_mosaic.version = 11 : i64} {
  func.func @_lstm_disc_kernel(%arg0: i32, %arg1: memref<8x16xf32, #tpu.memory_space<vmem>>, %arg2: memref<16x384xf32, #tpu.memory_space<vmem>>, %arg3: memref<1x384xf32, #tpu.memory_space<vmem>>, %arg4: memref<128x16xf32, #tpu.memory_space<vmem>>, %arg5: memref<1x16xf32, #tpu.memory_space<vmem>>, %arg6: memref<1x16xf32, #tpu.memory_space<vmem>>, %arg7: memref<1x1xf32, #tpu.memory_space<smem>>, %arg8: memref<1x8xf32, #tpu.memory_space<vmem>>) attributes {dimension_semantics = [#tpu.dimension_semantics<parallel>], iteration_bounds = array<i64: 1>, scalar_prefetch = 0 : i64, scratch_operands = 0 : i64, tpu.core_type = #tpu.core_type<tc>, window_params = [{transform_indices = @transform_0, window_bounds = array<i64: 8, 16>}, {pipeline_mode = #tpu.pipeline_mode<synchronous>, transform_indices = @transform_1, window_bounds = array<i64: 16, 384>}, {pipeline_mode = #tpu.pipeline_mode<synchronous>, transform_indices = @transform_2, window_bounds = array<i64: 1, 384>}, {pipeline_mode = #tpu.pipeline_mode<synchronous>, transform_indices = @transform_3, window_bounds = array<i64: 128, 16>}, {pipeline_mode = #tpu.pipeline_mode<synchronous>, transform_indices = @transform_4, window_bounds = array<i64: 1, 16>}, {pipeline_mode = #tpu.pipeline_mode<synchronous>, transform_indices = @transform_5, window_bounds = array<i64: 1, 16>}, {transform_indices = @transform_6, window_bounds = array<i64: 1, 1>}, {transform_indices = @transform_7, window_bounds = array<i64: 1, 8>}]} {
    %c0 = arith.constant 0 : index
    %c0_0 = arith.constant 0 : index
    %0 = vector.load %arg1[%c0, %c0_0] : memref<8x16xf32, #tpu.memory_space<vmem>>, vector<8x16xf32>
    %c0_1 = arith.constant 0 : index
    %c0_2 = arith.constant 0 : index
    %1 = vector.load %arg2[%c0_1, %c0_2] : memref<16x384xf32, #tpu.memory_space<vmem>>, vector<16x384xf32>
    %cst = arith.constant dense<0.000000e+00> : vector<8x384xf32>
    %2 = tpu.matmul %0, %1, %cst {dimension_numbers = #tpu.dot_dimension_numbers<[1], [0], [0], [1], [0, 0, 1, 1], [], []>} : vector<8x16xf32>, vector<16x384xf32>, vector<8x384xf32> -> vector<8x384xf32>
    %c0_3 = arith.constant 0 : index
    %c0_4 = arith.constant 0 : index
    %3 = vector.load %arg3[%c0_3, %c0_4] : memref<1x384xf32, #tpu.memory_space<vmem>>, vector<1x384xf32>
    %4 = vector.broadcast %3 : vector<1x384xf32> to vector<8x384xf32>
    %5 = arith.addf %2, %4 : vector<8x384xf32>
    %6 = vector.extract_strided_slice %5 {offsets = [0, 0], sizes = [8, 128], strides = [1, 1]} : vector<8x384xf32> to vector<8x128xf32>
    %7 = arith.negf %6 : vector<8x128xf32>
    %8 = math.exp %7 : vector<8x128xf32>
    %cst_5 = arith.constant 1.000000e+00 : f32
    %9 = vector.broadcast %cst_5 : f32 to vector<8x128xf32>
    %10 = arith.addf %9, %8 : vector<8x128xf32>
    %11 = arith.divf %9, %10 : vector<8x128xf32>
    %12 = vector.extract_strided_slice %5 {offsets = [0, 128], sizes = [8, 128], strides = [1, 1]} : vector<8x384xf32> to vector<8x128xf32>
    %13 = math.tanh %12 : vector<8x128xf32>
    %14 = vector.extract_strided_slice %5 {offsets = [0, 256], sizes = [8, 128], strides = [1, 1]} : vector<8x384xf32> to vector<8x128xf32>
    %15 = arith.negf %14 : vector<8x128xf32>
    %16 = math.exp %15 : vector<8x128xf32>
    %cst_6 = arith.constant 1.000000e+00 : f32
    %17 = vector.broadcast %cst_6 : f32 to vector<8x128xf32>
    %18 = arith.addf %17, %16 : vector<8x128xf32>
    %19 = arith.divf %17, %18 : vector<8x128xf32>
    %20 = arith.mulf %11, %13 : vector<8x128xf32>
    %21 = math.tanh %20 : vector<8x128xf32>
    %22 = arith.mulf %19, %21 : vector<8x128xf32>
    %c0_7 = arith.constant 0 : index
    %c0_8 = arith.constant 0 : index
    %23 = vector.load %arg4[%c0_7, %c0_8] : memref<128x16xf32, #tpu.memory_space<vmem>>, vector<128x16xf32>
    %cst_9 = arith.constant dense<0.000000e+00> : vector<8x16xf32>
    %24 = tpu.matmul %22, %23, %cst_9 {dimension_numbers = #tpu.dot_dimension_numbers<[1], [0], [0], [1], [0, 0, 1, 1], [], []>} : vector<8x128xf32>, vector<128x16xf32>, vector<8x16xf32> -> vector<8x16xf32>
    %c0_10 = arith.constant 0 : index
    %c0_11 = arith.constant 0 : index
    %25 = vector.load %arg5[%c0_10, %c0_11] : memref<1x16xf32, #tpu.memory_space<vmem>>, vector<1x16xf32>
    %26 = vector.broadcast %25 : vector<1x16xf32> to vector<8x16xf32>
    %27 = arith.addf %24, %26 : vector<8x16xf32>
    %cst_12 = arith.constant 0.000000e+00 : f32
    %28 = vector.broadcast %cst_12 : f32 to vector<8x16xf32>
    %29 = arith.cmpf oge, %27, %28 : vector<8x16xf32>
    %cst_13 = arith.constant 1.000000e-01 : f32
    %30 = vector.broadcast %cst_13 : f32 to vector<8x16xf32>
    %31 = arith.mulf %30, %27 : vector<8x16xf32>
    %32 = arith.select %29, %27, %31 : vector<8x16xi1>, vector<8x16xf32>
    %c0_14 = arith.constant 0 : index
    %c0_15 = arith.constant 0 : index
    %33 = vector.load %arg6[%c0_14, %c0_15] : memref<1x16xf32, #tpu.memory_space<vmem>>, vector<1x16xf32>
    %34 = vector.broadcast %33 : vector<1x16xf32> to vector<8x16xf32>
    %35 = arith.mulf %32, %34 : vector<8x16xf32>
    %cst_16 = arith.constant dense<0.000000e+00> : vector<8xf32>
    %36 = vector.multi_reduction <add>, %35, %cst_16 [1] : vector<8x16xf32> to vector<8xf32>
    %37 = vector.shape_cast %36 : vector<8xf32> to vector<8x1xf32>
    %c0_17 = arith.constant 0 : index
    %c0_18 = arith.constant 0 : index
    %38 = memref.load %arg7[%c0_17, %c0_18] : memref<1x1xf32, #tpu.memory_space<smem>>
    %39 = vector.broadcast %38 : f32 to vector<8x1xf32>
    %40 = arith.addf %37, %39 : vector<8x1xf32>
    %41 = arith.negf %40 : vector<8x1xf32>
    %42 = math.exp %41 : vector<8x1xf32>
    %cst_19 = arith.constant 1.000000e+00 : f32
    %43 = vector.broadcast %cst_19 : f32 to vector<8x1xf32>
    %44 = arith.addf %43, %42 : vector<8x1xf32>
    %45 = arith.divf %43, %44 : vector<8x1xf32>
    %46 = tpu.transpose %45, [1, 0] : vector<8x1xf32> -> vector<1x8xf32>
    %c0_20 = arith.constant 0 : index
    %c0_21 = arith.constant 0 : index
    %47 = vector.load %arg8[%c0_20, %c0_21] : memref<1x8xf32, #tpu.memory_space<vmem>>, vector<1x8xf32>
    tpu.vector_store %arg8[%c0_20, %c0_21], %46 {strides = array<i32>} : memref<1x8xf32, #tpu.memory_space<vmem>>, vector<1x8xf32>,
    return
  }
  func.func @transform_0(%arg0: i32) -> (i32, i32) {
    %c0_i32 = arith.constant 0 : i32
    %c0_i32_0 = arith.constant 0 : i32
    return %arg0, %c0_i32 : i32, i32
  }
  func.func @transform_1(%arg0: i32) -> (i32, i32) {
    %c0_i32 = arith.constant 0 : i32
    %c0_i32_0 = arith.constant 0 : i32
    %c0_i32_1 = arith.constant 0 : i32
    return %c0_i32, %c0_i32_0 : i32, i32
  }
  func.func @transform_2(%arg0: i32) -> (i32, i32) {
    %c0_i32 = arith.constant 0 : i32
    %c0_i32_0 = arith.constant 0 : i32
    %c0_i32_1 = arith.constant 0 : i32
    return %c0_i32, %c0_i32_0 : i32, i32
  }
  func.func @transform_3(%arg0: i32) -> (i32, i32) {
    %c0_i32 = arith.constant 0 : i32
    %c0_i32_0 = arith.constant 0 : i32
    %c0_i32_1 = arith.constant 0 : i32
    return %c0_i32, %c0_i32_0 : i32, i32
  }
  func.func @transform_4(%arg0: i32) -> (i32, i32) {
    %c0_i32 = arith.constant 0 : i32
    %c0_i32_0 = arith.constant 0 : i32
    %c0_i32_1 = arith.constant 0 : i32
    return %c0_i32, %c0_i32_0 : i32, i32
  }
  func.func @transform_5(%arg0: i32) -> (i32, i32) {
    %c0_i32 = arith.constant 0 : i32
    %c0_i32_0 = arith.constant 0 : i32
    %c0_i32_1 = arith.constant 0 : i32
    return %c0_i32, %c0_i32_0 : i32, i32
  }
  func.func @transform_6(%arg0: i32) -> (i32, i32) {
    %c0_i32 = arith.constant 0 : i32
    %c0_i32_0 = arith.constant 0 : i32
    %c0_i32_1 = arith.constant 0 : i32
    return %c0_i32, %c0_i32_0 : i32, i32
  }
  func.func @transform_7(%arg0: i32) -> (i32, i32) {
    %c0_i32 = arith.constant 0 : i32
    %c0_i32_0 = arith.constant 0 : i32
    return %c0_i32, %arg0 : i32, i32
  }
}

</mosaic_0001>

<bundles_post_ra>
// kernel: tpu_custom_call.1
= control target key start
LH: loop header
LB: loop body
LE: loop exit
PB: predicated region body
PF: predicated region fallthrough
CT: control target
= control target key end

     0   :  { %v521_v5 = vmov 0.0   ;;  %v522_v7 = vmov 0.0|0.0   ;;  %vm523_vm0 = vmmov 0   ;;  %s661_s0 = inlined_call_operand.vmem [shape: f32[8,16], index: 0, kind: input, shape index: {}]   ;;  %s662_s1 = inlined_call_operand.vmem [shape: f32[16,384], index: 1, kind: input, shape index: {}]   ;;  %s663_s2 = inlined_call_operand.vmem [shape: f32[1,384], index: 2, kind: input, shape index: {}]   ;;  %s664_s3 = inlined_call_operand.vmem [shape: f32[128,16], index: 3, kind: input, shape index: {}]   ;;  %s665_s4 = inlined_call_operand.vmem [shape: f32[1,16], index: 4, kind: input, shape index: {}]   ;;  %s666_s5 = inlined_call_operand.vmem [shape: f32[1,16], index: 5, kind: input, shape index: {}]   ;;  %s667_s6 = inlined_call_operand.<no memory space> [shape: f32[1,1], index: 6, kind: input, shape index: {}]   ;;  %s668_s7 = inlined_call_operand.hbm [shape: f32[1,8], index: 7, kind: output, shape index: {}]  }
   0x1   :  { %v30_v0 = vld [vmem:[%s662_s1 + $0x8] sm:$0xff]  ;;  %v33_v1 = vld [vmem:[%s662_s1 + $0x20] sm:$0xff]  ;;  %v32_v4 = vld [vmem:[%s662_s1 + $0x18] sm:$0xff]  ;;  %120 = vmatprep.mubr.f32.mxu1 %v521_v5  ;;  %453 = vmatprep.subr.bf16.mxu0 %v522_v7 }
   0x2   :  { %v29_v2 = vld [vmem:[%s662_s1] sm:$0xff]  ;;  %v446_v3 = vpack.c.bf16 %v33_v1, %v30_v0  ;;  %v31_v6 = vld [vmem:[%s662_s1 + $0x10] sm:$0xff]  ;;  %v34_v9 = vld [vmem:[%s662_s1 + $0x28] sm:$0xff]  ;;  %443 = vmatprep.mubr.msk.f32.mxu0 %vm523_vm0, %v521_v5 }
   0x3   :  { %v448_v8 = vpack.c.bf16 %v32_v4, %v29_v2 }
   0x4   :  { %13 = vsyncpa [#allocation4], 0  ;;  %447 = vmatprep.subr.bf16.mxu1 %v446_v3  ;;  %v28_v10 = vld [vmem:[%s661_s0] sm:$0xff]  ;;  %vm52_vm1 = vcmask 130048   ;;  %v451_v11 = vpack.c.bf16 %v34_v9, %v31_v6  ;;  %v214_v13 = vld [vmem:[%s664_s3 + $0x8] sm:$0xff]  ;;  %v37_v36 = vlaneseq  ;;  %v321_v9 = vstv %s667_s6 }
   0x5   :  { %449 = vmatpush1.bf16.msra.mxu1 %v448_v8  ;;  %v213_v12 = vld [vmem:[%s664_s3] sm:$0xff]  ;;  %v215_v15 = vld [vmem:[%s664_s3 + $0x10] sm:$0xff]  ;;  %v216_v16 = vld [vmem:[%s664_s3 + $0x18] sm:$0xff]  ;;  %vm361_vm3 = vcmask 57344  }
   0x6   :  { %450 = vmatprep.subr.bf16.mxu1 %v522_v7  ;;  %v454_v14 = vpack.c.bf16 %v214_v13, %v213_v12  ;;  %v457_v17 = vpack.c.bf16 %v216_v16, %v215_v15  ;;  %v217_v18 = vld [vmem:[%s664_s3 + $0x20] sm:$0xff]  ;;  %v218_v19 = vld [vmem:[%s664_s3 + $0x28] sm:$0xff]  ;;  %v219_v21 = vld [vmem:[%s664_s3 + $0x30] sm:$0xff]  ;;  %v38_v37 = vshrl.u32 %v37_v36, 7 }
   0x7   :  { %v460_v20 = vpack.c.bf16 %v218_v19, %v217_v18  ;;  %v220_v22 = vld [vmem:[%s664_s3 + $0x38] sm:$0xff]  ;;  %v221_v24 = vld [vmem:[%s664_s3 + $0x40] sm:$0xff]  ;;  %v222_v25 = vld [vmem:[%s664_s3 + $0x48] sm:$0xff] }
   0x8   :  { %377 = vmatmul.mubr.msk.f32.vlgmr.msra.gmra.mrb[0].mxu1 %vm52_vm1, %v28_v10  ;;  %455 = vmatpush3.bf16.msra.mxu0 %v454_v14  ;;  %v463_v23 = vpack.c.bf16 %v220_v22, %v219_v21  ;;  %v466_v26 = vpack.c.bf16 %v222_v25, %v221_v24  ;;  %v223_v27 = vld [vmem:[%s664_s3 + $0x50] sm:$0xff]  ;;  %v224_v28 = vld [vmem:[%s664_s3 + $0x58] sm:$0xff]  ;;  %v225_v30 = vld [vmem:[%s664_s3 + $0x60] sm:$0xff]  ;;  %v39_v38 = vsub.s32 0, %v38_v37  ;;  %v47_v41 = vsub.s32 2, %v38_v37 }
   0x9   :  { %452 = vmatpush3.bf16.msra.mxu1 %v451_v11  ;;  %408 = vmatprep.mubr.msk.f32.mxu1 %vm523_vm0, %v521_v5  ;;  %v469_v29 = vpack.c.bf16 %v224_v28, %v223_v27  ;;  %v226_v31 = vld [vmem:[%s664_s3 + $0x68] sm:$0xff]  ;;  %v227_v33 = vld [vmem:[%s664_s3 + $0x70] sm:$0xff]  ;;  %v228_v34 = vld [vmem:[%s664_s3 + $0x78] sm:$0xff]  ;;  %v43_v48 = vsub.s32 1, %v38_v37 }
   0xa   :  { %456 = vmatprep.subr.bf16.mxu0 %v522_v7  ;;  %v472_v32 = vpack.c.bf16 %v226_v31, %v225_v30  ;;  %v475_v35 = vpack.c.bf16 %v228_v34, %v227_v33  ;;  %v35_v39 = vld [vmem:[%s663_s2] sm:$0x7] }
   0xb   :  { %v40_v40 = vrot.slane %v35_v39, %v39_v38  ;;  %v48_v45 = vrot.slane %v35_v39, %v47_v41  ;;  %v44_v52 = vrot.slane %v35_v39, %v43_v48  ;;  %v381_v0 = vld [vmem:[%s665_s4] ss:$0 sm:$0xff]  ;;  %s524_s4 = smov [#allocation3]  }
   0xc   :  { %409 = vmatmul.mubr.msk.f32.vlgmr.msra.gmra.mrb[2].mxu1 %vm52_vm1, %v28_v10  ;;  %458 = vmatpush3.bf16.msra.mxu0 %v457_v17  ;;  %v382_v5 = vld [vmem:[%s666_s5] ss:$0 sm:$0xff]  ;;  %s369_s5 = sshll.u32 %s524_s4, 4  ;;  %s370_s5 = int_to_ptr.vmem [resolvable:$true] %s369_s5 }
   0xd   :  { %459 = vmatprep.subr.bf16.mxu0 %v522_v7  ;;  %s497_s26 = scalar_lea.vmem %s370_s5, 16  ;;  %s501_s27 = scalar_lea.vmem %s370_s5, 32 }
   0xe   :  { %p498_p0 = scmp.ne.s32.totalorder %s370_s5, %s497_s26  ;;  %p502_p1 = scmp.lt.s32.totalorder %s370_s5, %s370_s5 }
   0xf   :  { %p503_p2 = scmp.lt.s32.totalorder %s501_s27, %s497_s26 }
  0x10   :  { %461 = vmatpush3.bf16.msra.mxu0 %v460_v20 }
  0x11   :  { %462 = vmatprep.subr.bf16.mxu0 %v522_v7  ;;  %p504_p3 = por %p503_p2, %p502_p1 }
  0x13   :  { %p505_p4 = pnand %p504_p3, %p498_p0 }
  0x14   :  { %464 = vmatpush3.bf16.msra.mxu0 %v463_v23 }
  0x15   :  { %465 = vmatprep.subr.bf16.mxu0 %v522_v7 }
  0x18   :  { %467 = vmatpush3.bf16.msra.mxu0 %v466_v26 }
  0x19   :  { %468 = vmatprep.subr.bf16.mxu0 %v522_v7 }
  0x1c   :  { %470 = vmatpush3.bf16.msra.mxu0 %v469_v29 }
  0x1d   :  { %471 = vmatprep.subr.bf16.mxu0 %v522_v7 }
  0x20   :  { %473 = vmatpush3.bf16.msra.mxu0 %v472_v32 }
  0x21   :  { %474 = vmatprep.subr.bf16.mxu0 %v522_v7 }
  0x24   :  { %476 = vmatpush3.bf16.msra.mxu0 %v475_v35 }
  0xdb   :  { %v122_v42 = vpop.f32.mrb[0].mxu1 }
  0xdc   :  { %v123_v43 = vadd.f32 %v122_v42, %v40_v40  ;;  %v124_v44 = vpop.f32.mrb[1].mxu1 }
  0xdd   :  { %v125_v53 = vadd.f32 %v124_v44, %v44_v52 }
  0xde   :  { %v379_v46 = vmul.f32 -1.442695, %v123_v43 }
  0xdf   :  { %v193_v47 = vpop.f32.mrb[2].mxu1 }
  0xe0   :  { %481 = vpow2.f32 %v379_v46  ;;  %v194_v49 = vadd.f32 %v193_v47, %v48_v45  ;;  %v410_v50 = vpop.f32.mrb[3].mxu1 }
  0xe2   :  { %v380_v51 = vmul.f32 -1.442695, %v194_v49 }
  0xe4   :  { %483 = vpow2.f32 %v380_v51 }
  0xe5   :  { %485 = vtanh.f32 %v125_v53 }
  0xea   :  { %v482_v54 = vpop.eup %481 }
  0xeb   :  { %v200_v55 = vadd.f32 1.0, %v482_v54 }
  0xed   :  { %487 = vrcp.f32 %v200_v55 }
  0xee   :  { %v484_v56 = vpop.eup %483 }
  0xef   :  { %v207_v57 = vadd.f32 1.0, %v484_v56  ;;  %v486_v58 = vpop.eup %485 }
  0xf1   :  { %489 = vrcp.f32 %v207_v57 }
  0xf7   :  { %v488_v59 = vpop.eup %487 }
  0xf8   :  { %v210_v60 = vmul.f32 %v488_v59, %v486_v58 }
  0xfa   :  { %491 = vtanh.f32 %v210_v60 }
  0xfb   :  { %v490_v61 = vpop.eup %489 }
 0x104   :  { %v492_v62 = vpop.eup %491 }
 0x105   :  { %v212_v63 = vmul.f32 %v492_v62, %v490_v61 }
 0x107   :  { %444 = vmatmul.mubr.f32.vlgmr.msra.gmra.mrb[0].mxu0 %v212_v63 }
 0x1da   :  { %v302_v1 = vpop.f32.mrb[0].mxu0 }
 0x1db   :  { %v303_v2 = vadd.f32 %v381_v0, %v302_v1  ;;  %v445_v3 = vpop.f32.mrb[1].mxu0 }
 0x1dd   :  { %v307_v4 = vmul.f32 0.1, %v303_v2  ;;  %vm306_vm2 = vcmp.ge.f32.partialorder %v303_v2, 0.0 }
 0x1df   :  { %v308_v6 = vsel %vm306_vm2, %v303_v2, %v307_v4 }
 0x1e0   :  { %v316_v7 = vmul.f32 %v382_v5, %v308_v6 }
 0x1e2   :  { %v317_v8 = vsel %vm52_vm1, %v316_v7, 0.0 }
 0x1e3   :  { %318 = vadd.xlane.f32.xlu0 %v317_v8 }
 0x270   :  { %v319_v10 = vpop.xlane.xlu0 %318 }
 0x271   :  { %v322_v11 = vadd.f32 %v321_v9, %v319_v10 }
 0x273   :  { %v383_v12 = vmul.f32 -1.442695, %v322_v11 }
 0x275   :  { %493 = vpow2.f32 %v383_v12 }
 0x27f   :  { %v494_v13 = vpop.eup %493 }
 0x280   :  { %v326_v14 = vadd.f32 1.0, %v494_v13 }
 0x282   :  { %495 = vrcp.f32 %v326_v14 }
 0x28c   :  { %v496_v15 = vpop.eup %495 }
 0x28d   :  { %329 = vxpose.xlu0.b32.start.end [1/1] (short) (narrow) %v496_v15, 8 }
 0x30d   :  { %v345_v16 = vpop.trf.xlu0 }
 0x30e   :  { %362 = vst.msk [vmem:[#allocation3] sm:$0x1] %vm361_vm3, %v345_v16 }
 0x30f   :  { %508 = shalt.err (!%p505_p4)
}
 0x310   :  { %s509_s29 = scalar_lea.hbm %s668_s7, 16 }
 0x311   :  { %p510_p5 = scmp.ne.s32.totalorder %s668_s7, %s509_s29  ;;  %p513_p6 = scmp.lt.u32.totalorder %s509_s29, %s668_s7 }
 0x313   :  { %p515_p7 = pnand %p513_p6, %p510_p5 }
 0x315   :  { %518 = shalt.err (!%p515_p7)
}
 0x316   :  { %372 = dma.vmem_to_hbm [thread:$0]  %s370_s5, 16, %s668_s7, [#allocation4]  }
 0x317   :  { %519 = dma.done.wait [#allocation4], 16  }
 0x318   :  { %520 = vsyncadd [#allocation4], 4294967280 }
 0x319   :  { %376 = vsyncpa [#allocation4], 1 }

</bundles_post_ra>
